<compile_context>
chip_gen: v7x
topology: tpu7x:2x2x1
jax: 0.10.0
libtpu: 0.0.40
codegen_flags: <defaults>
</compile_context>

<pallas_src>
import jax
import jax.numpy as jnp
from jax import lax
from jax.experimental import pallas as pl
from jax.experimental.pallas import tpu as pltpu


def rmsnorm_kernel(x_ref, g_ref, o_ref):
    """x_ref: (Bt, C, TN) input tile; g_ref: (C, 1) f32 gain (already * sqrt(C));
    o_ref: (Bt, C, TN).  Channel reduction over the sublane axis, N on lanes."""
    x = x_ref[...].astype(jnp.float32)                   # accumulate in f32 always
    ssq = jnp.sum(x * x, axis=1, keepdims=True)          # (Bt, 1, TN)
    # F.normalize eps: 1 / max(||x||, 1e-12) == rsqrt(max(ssq, 1e-24)); rsqrt -> EUP.
    inv = lax.rsqrt(jnp.maximum(ssq, 1e-24))
    o_ref[...] = (x * inv * g_ref[...]).astype(o_ref.dtype)


def _pick_tiles(b, c, n, dtype_bytes, target_bytes=3 << 20):
    """Choose (Bt, TN).  TN is a multiple of 128 (lane-dense) unless it covers the
    whole N axis; block size is ~target_bytes.  Batch is folded into the block only
    when the whole N axis fits, keeping >=2 grid steps when possible (v7x megacore)."""
    col_bytes = max(1, c * dtype_bytes)
    tn_max = max(128, (target_bytes // col_bytes) // 128 * 128)
    if n <= tn_max:
        tn = n                                            # whole spatial axis, one N block
        bt = max(1, min(b, target_bytes // max(1, col_bytes * n)))
        if b >= 2:                                        # leave >=2 grid steps for 2 TCs
            bt = min(bt, max(1, b // 2))
    else:
        tn = tn_max
        bt = 1
    return bt, tn


def rmsnorm(x, g, *, tile_n=None, tile_b=None):
    """x: (B, C, H, W, D) float32 or bfloat16; g: (1, C, 1, 1, 1) — PyTorch convention."""
    B, C, H, W, D = x.shape
    N = H * W * D

    x_flat = x.reshape(B, C, N)                           # channels-first: N on the lane axis
    # Fold the sqrt(C) gain into g once, in f32, outside the kernel.
    g_col = g.reshape(C, 1).astype(jnp.float32) * (C ** 0.5)

    dtype_bytes = jnp.dtype(x.dtype).itemsize
    auto_bt, auto_tn = _pick_tiles(B, C, N, dtype_bytes)
    BT = tile_b if tile_b is not None else auto_bt
    TN = tile_n if tile_n is not None else auto_tn

    grid = (pl.cdiv(B, BT), pl.cdiv(N, TN))

    # in + out double-buffering ~= 4x block; keep generous headroom but stay inside
    # v7x's 64 MiB physical VMEM.
    block_bytes = BT * C * TN * dtype_bytes
    vmem_limit = int(min(64 << 20, max(32 << 20, 6 * block_bytes)))

    out_flat = pl.pallas_call(
        rmsnorm_kernel,
        out_shape=jax.ShapeDtypeStruct((B, C, N), x.dtype),
        grid_spec=pltpu.PrefetchScalarGridSpec(
            num_scalar_prefetch=0,
            grid=grid,
            in_specs=[
                pl.BlockSpec((BT, C, TN), lambda b, n: (b, 0, n)),
                pl.BlockSpec((C, 1), lambda b, n: (0, 0)),
            ],
            out_specs=pl.BlockSpec((BT, C, TN), lambda b, n: (b, 0, n)),
        ),
        compiler_params=pltpu.CompilerParams(
            dimension_semantics=("parallel", "parallel"),
            vmem_limit_bytes=vmem_limit),
    )(x_flat, g_col)

    return out_flat.reshape(B, C, H, W, D)


def ref_forward(x, g):
    """Pure-JAX reference mirroring the PyTorch forward exactly (NCDHW, eps=1e-12)."""
    C = x.shape[1]
    xf = x.astype(jnp.float32)
    nrm = jnp.sqrt(jnp.sum(xf * xf, axis=1, keepdims=True))
    return xf / jnp.maximum(nrm, 1e-12) * g.astype(jnp.float32) * (C ** 0.5)


if __name__ == "__main__":
    # Small shapes consistent with the module (5-D Conv3d-style input).
    B, C, H, W, D = 2, 8, 16, 16, 16                      # N = 4096

    key = jax.random.PRNGKey(0)
    kx, kg = jax.random.split(key)
    x = jax.random.normal(kx, (B, C, H, W, D), jnp.float32)
    g = 1.0 + 0.05 * jax.random.normal(kg, (1, C, 1, 1, 1), jnp.float32)

    ref = ref_forward(x, g)

    # 1) Auto tiling: whole N per block, 2 grid steps along batch (megacore-friendly).
    out = jax.block_until_ready(rmsnorm(x, g))
    assert out.shape == (B, C, H, W, D)
    assert jnp.allclose(out, ref, rtol=1e-4, atol=1e-5), "mismatch vs reference (auto tile)"

    # 2) Forced smaller, non-dividing tile: exercises the cdiv/ragged-trailing-block path.
    out_ragged = jax.block_until_ready(rmsnorm(x, g, tile_n=1536))
    assert jnp.allclose(out_ragged, ref, rtol=1e-4, atol=1e-5), "mismatch vs reference (ragged tile)"

    # 3) bf16 I/O path (HBM-bound kernel => ~2x throughput); f32 accumulation inside.
    out_bf16 = jax.block_until_ready(rmsnorm(x.astype(jnp.bfloat16), g))
    assert out_bf16.dtype == jnp.bfloat16
    assert jnp.allclose(out_bf16.astype(jnp.float32), ref, rtol=3e-2, atol=3e-2), \
        "mismatch vs reference (bf16)"

    print("KERNEL_OK")
</pallas_src>

<mosaic_0001>
module attributes {stable_mosaic.version = 11 : i64} {
  func.func @rmsnorm_kernel(%arg0: i32, %arg1: i32, %arg2: memref<1x8x4096xf32, #tpu.memory_space<vmem>>, %arg3: memref<8x1xf32, #tpu.memory_space<vmem>>, %arg4: memref<1x8x4096xf32, #tpu.memory_space<vmem>>) attributes {dimension_semantics = [#tpu.dimension_semantics<parallel>, #tpu.dimension_semantics<parallel>], iteration_bounds = array<i64: 2, 1>, scalar_prefetch = 0 : i64, scratch_operands = 0 : i64, tpu.core_type = #tpu.core_type<tc>, window_params = [{transform_indices = @transform_0, window_bounds = array<i64: 1, 8, 4096>}, {pipeline_mode = #tpu.pipeline_mode<synchronous>, transform_indices = @transform_1, window_bounds = array<i64: 8, 1>}, {transform_indices = @transform_2, window_bounds = array<i64: 1, 8, 4096>}]} {
    %c0 = arith.constant 0 : index
    %c0_0 = arith.constant 0 : index
    %c0_1 = arith.constant 0 : index
    %0 = vector.load %arg2[%c0, %c0_0, %c0_1] : memref<1x8x4096xf32, #tpu.memory_space<vmem>>, vector<1x8x4096xf32>
    %1 = arith.mulf %0, %0 : vector<1x8x4096xf32>
    %cst = arith.constant dense<0.000000e+00> : vector<1x4096xf32>
    %2 = vector.multi_reduction <add>, %1, %cst [1] : vector<1x8x4096xf32> to vector<1x4096xf32>
    %3 = vector.shape_cast %2 : vector<1x4096xf32> to vector<1x1x4096xf32>
    %cst_2 = arith.constant 1.000000e-24 : f32
    %4 = vector.broadcast %cst_2 : f32 to vector<1x1x4096xf32>
    %5 = arith.maximumf %3, %4 : vector<1x1x4096xf32>
    %6 = math.rsqrt %5 : vector<1x1x4096xf32>
    %7 = vector.broadcast %6 : vector<1x1x4096xf32> to vector<1x8x4096xf32>
    %8 = arith.mulf %0, %7 : vector<1x8x4096xf32>
    %c0_3 = arith.constant 0 : index
    %c0_4 = arith.constant 0 : index
    %9 = vector.load %arg3[%c0_3, %c0_4] : memref<8x1xf32, #tpu.memory_space<vmem>>, vector<8x1xf32>
    %10 = vector.shape_cast %9 : vector<8x1xf32> to vector<1x8x1xf32>
    %11 = vector.broadcast %10 : vector<1x8x1xf32> to vector<1x8x4096xf32>
    %12 = arith.mulf %8, %11 : vector<1x8x4096xf32>
    %c0_5 = arith.constant 0 : index
    %c0_6 = arith.constant 0 : index
    %c0_7 = arith.constant 0 : index
    %13 = vector.load %arg4[%c0_5, %c0_6, %c0_7] : memref<1x8x4096xf32, #tpu.memory_space<vmem>>, vector<1x8x4096xf32>
    tpu.vector_store %arg4[%c0_5, %c0_6, %c0_7], %12 {strides = array<i32>} : memref<1x8x4096xf32, #tpu.memory_space<vmem>>, vector<1x8x4096xf32>,
    return
  }
  func.func @transform_0(%arg0: i32, %arg1: i32) -> (i32, i32, i32) {
    %c0_i32 = arith.constant 0 : i32
    %c0_i32_0 = arith.constant 0 : i32
    return %arg0, %c0_i32, %arg1 : i32, i32, i32
  }
  func.func @transform_1(%arg0: i32, %arg1: i32) -> (i32, i32) {
    %c0_i32 = arith.constant 0 : i32
    %c0_i32_0 = arith.constant 0 : i32
    %c0_i32_1 = arith.constant 0 : i32
    return %c0_i32, %c0_i32_0 : i32, i32
  }
  func.func @transform_2(%arg0: i32, %arg1: i32) -> (i32, i32, i32) {
    %c0_i32 = arith.constant 0 : i32
    %c0_i32_0 = arith.constant 0 : i32
    return %arg0, %c0_i32, %arg1 : i32, i32, i32
  }
}

</mosaic_0001>

<bundles_post_ra>
// kernel: tpu_custom_call.1
= control target key start
LH: loop header
LB: loop body
LE: loop exit
PB: predicated region body
PF: predicated region fallthrough
CT: control target
= control target key end

     0   :  { %7 = vsyncpa [#allocation3], 0  ;;  %s1576_s0 = inlined_call_operand.hbm [shape: f32[2,8,4096], index: 0, kind: input, shape index: {}]   ;;  %s1577_s1 = inlined_call_operand.vmem [shape: f32[8,1], index: 1, kind: input, shape index: {}]   ;;  %s1578_s2 = inlined_call_operand.hbm [shape: f32[2,8,4096], index: 2, kind: output, shape index: {}]  }
   0x1   :  { %9 = vsyncpa [#allocation3 + $0x1], 0 }
   0x2   :  { %10 = vsyncpa [#allocation4], 0 }
   0x3   :  { %12 = vsyncpa [#allocation4 + $0x1], 0  ;;  %s980_s9 = smov 0   ;;  %s982_s10 = smov 0  }
   0x4   :  { %s984_s11 = smov 0   ;;  %s986_s12 = smov 0  }
   0x5   :  { %s988_s13 = smov 0   ;;  %s990_s14 = smov 0  }
   0x6 LB: > { %s703_s15 = sadd.s32 4294967295, %s960_s14   ;;  %s704_s16 = sadd.s32 4294967294, %s960_s14   ;;  %s960_s14 = sphi %s990_s14, %s18_s14   ;;  %s956_s13 = sphi %s988_s13, %s1678_s13   ;;  %s952_s12 = sphi %s986_s12, %s1677_s12   ;;  %s948_s11 = sphi %s984_s11, %s1676_s11   ;;  %s944_s10 = sphi %s982_s10, %s1675_s10   ;;  %s940_s9 = sphi %s980_s9, %s1674_s9  }
   0x7   : > { %s30_s17 = sadd.s32 1, %s956_s13  ;;  %s39_s18 = sadd.s32 1, %s948_s11 }
   0x8   : > { %p32_p0 = scmp.ge.s32.totalorder %s30_s17, 2  ;;  %p46_p1 = scmp.ne.s32.totalorder %s948_s11, %s944_s10 }
   0x9   : > { %p47_p2 = scmp.eq.s32.totalorder %s960_s14, 0  ;;  %p52_p3 = scmp.ne.s32.totalorder %s944_s10, %s940_s9 }
   0xa   : > { %s1680_s17 = smov (%p32_p0, %s30_s17), 0  ;;  %p53_p5 = scmp.eq.s32.totalorder %s703_s15, 0 }
   0xb   : > { %p1021_p4 = por %p47_p2, %p46_p1  ;;  %s34_s20 = ssub.s32 %s956_s13, %s1680_s17 }
   0xc   : > { %p99_p6 = scmp.eq.s32.totalorder %s703_s15, 1  ;;  %p37_p7 = scmp.eq.s32.totalorder %s34_s20, 0 }
   0xd   : > { %p1027_p8 = por %p53_p5, %p52_p3  ;;  %p105_p10 = scmp.eq.s32.totalorder %s704_s16, 1 }
   0xe   : > { %p1031_p9 = por %p99_p6, %p46_p1  ;;  %p732_p13 = scmp.lt.s32.totalorder %s960_s14, 2 }
   0xf   : > { %s1036_s23 = scalar_select %p37_p7, %s948_s11, %s39_s18  }
  0x10   : > { %s1610_s22 = scalar_select %p1031_p9, 1, 0 }
  0x11   : > { %p1038_p11 = por %p105_p10, %p52_p3  ;;  %s128_s25 = sand.u32 1, %s948_s11  }
  0x12   : > { %s707_s26 = sshll.u32 %s128_s25, 8  ;;  %s718_s27 = sshll.u32 %s956_s13, 12 }
  0x13   : > { %s1611_s24 = scalar_select %p1038_p11, 1, 0 }
  0x14   : > { %s1049_s30 = scalar_lea.hbm %s1576_s0, %s718_s27  ;;  %s132_s3 = scalar_lea.vmem [#allocation2], %s707_s26 }
  0x15   : > { %s142_s4 = sshll.u32 %s132_s3, 4  ;;  %p1055_p0 = pnand %p732_p13, %p1021_p4  ;;  %s1051_s4 = int_to_ptr.vmem [resolvable:$true] %s142_s4 }
  0x16   : > { %s129_s6 = scalar_lea.sflag [#allocation3], %s128_s25  ;;  %s848_s7 = scalar_lea.hbm %s1049_s30, 4096 }
  0x17   : > { %p849_p3 = scmp.ne.s32.totalorder %s1049_s30, %s848_s7  ;;  %p850_p5 = pneg %p1055_p0 }
  0x18   : > { %s853_s16 = scalar_lea.hbm %s1576_s0, 8192  ;;  %p854_p4 = scmp.lt.u32.totalorder %s1049_s30, %s1576_s0 }
  0x19   : > { %p851_p6 = pnand %p850_p5, %p849_p3  ;;  %p855_p10 = scmp.lt.u32.totalorder %s853_s16, %s848_s7 }
  0x1a   : > { %p857_p12 = scmp.lt.u32.totalorder %s848_s7, %s1049_s30 }
  0x1b   : > { %p852_p7 = pneg %p851_p6  ;;  %p856_p13 = por %p855_p10, %p854_p4 }
  0x1d   : > { %p858_p1 = por %p857_p12, %p856_p13 }
  0x1f   : > { %p859_p2 = pnand %p858_p1, %p852_p7 }
  0x21   : > { %862 = shalt.err (!%p859_p2)
}
  0x22   : > { %s863_s20 = scalar_lea.vmem %s1051_s4, 4096  ;;  %s962_s25 = smov [#allocation2]  }
  0x23   : > { %p864_p3 = scmp.ne.s32.totalorder %s1051_s4, %s863_s20  ;;  %s868_s26 = sshll.u32 %s962_s25, 4  ;;  %s869_s26 = int_to_ptr.vmem [resolvable:$false] %s868_s26 }
  0x24   : > { %s870_s27 = scalar_lea.vmem %s869_s26, 8192  ;;  %p871_p9 = scmp.lt.s32.totalorder %s1051_s4, %s869_s26 }
  0x25   : > { %p866_p6 = pnand %p864_p3, %p850_p5  ;;  %p872_p4 = scmp.lt.s32.totalorder %s870_s27, %s863_s20 }
  0x27   : > { %p867_p11 = pneg %p866_p6  ;;  %p873_p10 = por %p872_p4, %p871_p9 }
  0x29   : > { %p874_p12 = pnand %p873_p10, %p867_p11 }
  0x2b   : > { %877 = shalt.err (!%p874_p12)
}
  0x2c   : > { %727 = dma.hbm_to_vmem [thread:$0]  (!%p1055_p0), %s1049_s30, 4096, %s1051_s4, %s129_s6  }
  0x2d   : > { %p1613_p1 = scmp.lt.s32.totalorder %s960_s14, 3  ;;  %p1614_p2 = scmp.ge.s32.totalorder %s960_s14, 1 }
  0x2f   : > { %p148_p5 = pnand %p1614_p2, %p1613_p1 }
  0x31   : > { %151 = sbr.rel (%p148_p5) target bundleno = 222 (0xde), region = 28 }
  0x38   : > { %s1091_s28 = sand.u32 1, %s944_s10  }
  0x39   : > { %s711_s29 = sshll.u32 %s1091_s28, 8  ;;  %s154_s3 = scalar_lea.sflag [#allocation3], %s1091_s28 }
  0x3a   : > { %s1097_s5 = scalar_lea.vmem [#allocation2], %s711_s29 }
  0x3b   : > { %931 = dma.done.wait (%p1027_p8), %s154_s3, 4096  }
  0x3c   : > { %933 = vsyncadd (%p1027_p8), %s154_s3, 4294963200  ;;  %v963_v0 = vmov 0   ;;  %v532_v1 = vld [vmem:[%s1577_s1] sm:$0xff]  ;;  %v1110_v3 = vld [vmem:[%s1097_s5 + $0x8] sm:$0xff]  ;;  %s1488_s21 = scalar_lea.vmem [#allocation5], %s711_s29  ;;  %s719_s6 = sshll.u32 %s952_s12, 12 }
  0x3d   : > { %783 = vset.pattern.permute.xlu0 %v963_v0  ;;  %v1107_v2 = vld [vmem:[%s1097_s5] sm:$0xff]  ;;  %v1113_v4 = vld [vmem:[%s1097_s5 + $0x10] sm:$0xff]  ;;  %v213_v6 = vmul.f32 %v1110_v3, %v1110_v3  ;;  %v1120_v7 = vld [vmem:[%s1097_s5 + $0x18] sm:$0xff]  ;;  %s619_s7 = sshll.u32 %s1488_s21, 4  ;;  %s1519_s15 = scalar_lea.hbm %s1578_s2, %s719_s6  ;;  %s1521_s7 = int_to_ptr.vmem [resolvable:$true] %s619_s7 }
  0x3e   : > { %535 = vperm.xlu0 %783, %v532_v1   ;;  %v212_v5 = vmul.f32 %v1107_v2, %v1107_v2  ;;  %v1123_v8 = vld [vmem:[%s1097_s5 + $0x20] sm:$0xff]  ;;  %v1126_v9 = vld [vmem:[%s1097_s5 + $0x28] sm:$0xff]  ;;  %v1129_v10 = vld [vmem:[%s1097_s5 + $0x30] sm:$0xff]  ;;  %v214_v12 = vmul.f32 %v1113_v4, %v1113_v4  ;;  %v215_v13 = vmul.f32 %v1120_v7, %v1120_v7  ;;  %s603_s16 = scalar_lea.sflag [#allocation4], %s1091_s28  ;;  %s878_s18 = scalar_lea.vmem %s1521_s7, 4096 }
  0x3f   : > { %1615 = vst [vmem:[#allocation8_spill] sm:$0xff] %v1123_v8  ;;  %1616 = vst [vmem:[#allocation9_spill] sm:$0xff] %v1126_v9  ;;  %v1132_v11 = vld [vmem:[%s1097_s5 + $0x38] sm:$0xff]  ;;  %v250_v15 = vrot.slane %v213_v6, 4  ;;  %v216_v16 = vmul.f32 %v1123_v8, %v1123_v8  ;;  %v217_v17 = vmul.f32 %v1126_v9, %v1126_v9  ;;  %v218_v18 = vmul.f32 %v1129_v10, %v1129_v10  ;;  %v1147_v20 = vld [vmem:[%s1097_s5 + $0x40] sm:$0xff]  ;;  %p879_p8 = scmp.ne.s32.totalorder %s1521_s7, %s878_s18  ;;  %p1671_p9 = scmp.ne.s32.totalorder %s1610_s22, 0 }
  0x40   : > { %1617 = vst [vmem:[#allocation10_spill] sm:$0xff] %v1129_v10  ;;  %1618 = vst [vmem:[#allocation11_spill] sm:$0xff] %v1132_v11  ;;  %v244_v14 = vrot.slane %v212_v5, 4  ;;  %v219_v19 = vmul.f32 %v1132_v11, %v1132_v11  ;;  %v1150_v21 = vld [vmem:[%s1097_s5 + $0x48] sm:$0xff]  ;;  %v256_v22 = vrot.slane %v214_v12, 4  ;;  %v1153_v23 = vld [vmem:[%s1097_s5 + $0x50] sm:$0xff]  ;;  %v220_v34 = vmul.f32 %v1147_v20, %v1147_v20 }
  0x41   : > { %1619 = vst [vmem:[#allocation12_spill] sm:$0xff] %v1147_v20  ;;  %1620 = vst [vmem:[#allocation13_spill] sm:$0xff] %v1150_v21  ;;  %v1156_v24 = vld [vmem:[%s1097_s5 + $0x58] sm:$0xff]  ;;  %v1159_v25 = vld [vmem:[%s1097_s5 + $0x60] sm:$0xff]  ;;  %v251_v27 = vadd.f32 %v250_v15, %v213_v6  ;;  %v262_v28 = vrot.slane %v215_v13, 4  ;;  %v268_v30 = vrot.slane %v216_v16, 4  ;;  %v221_v35 = vmul.f32 %v1150_v21, %v1150_v21  ;;  %p880_p11 = pnand %p879_p8, %p1671_p9 }
  0x42   : > { %1621 = vst [vmem:[#allocation14_spill] sm:$0xff] %v1153_v23  ;;  %1622 = vst [vmem:[#allocation15_spill] sm:$0xff] %v1156_v24  ;;  %v245_v26 = vadd.f32 %v244_v14, %v212_v5  ;;  %v1162_v29 = vld [vmem:[%s1097_s5 + $0x68] sm:$0xff]  ;;  %v274_v31 = vrot.slane %v217_v17, 4  ;;  %v1165_v32 = vld [vmem:[%s1097_s5 + $0x70] sm:$0xff]  ;;  %v280_v36 = vrot.slane %v218_v18, 4  ;;  %v1182_v40 = vmul.f32 %v1153_v23, %v1153_v23 }
  0x43   : > { %1623 = vst [vmem:[#allocation16_spill] sm:$0xff] %v1159_v25  ;;  %1624 = vst [vmem:[#allocation17_spill] sm:$0xff] %v1162_v29  ;;  %v1168_v33 = vld [vmem:[%s1097_s5 + $0x78] sm:$0xff]  ;;  %v286_v37 = vrot.slane %v219_v19, 4  ;;  %v1175_v38 = vld [vmem:[%s1097_s5 + $0x80] sm:$0xff]  ;;  %v1186_v41 = vmul.f32 %v1156_v24, %v1156_v24  ;;  %v1190_v42 = vmul.f32 %v1159_v25, %v1159_v25  ;;  %v257_v43 = vadd.f32 %v256_v22, %v214_v12  ;;  %p881_p0 = pneg %p880_p11  ;;  %s964_s19 = smov [#allocation5]  }
  0x44   : > { %1625 = vst [vmem:[#allocation18_spill] sm:$0xff] %v1165_v32  ;;  %1626 = vst [vmem:[#allocation19_spill] sm:$0xff] %v1168_v33  ;;  %v1178_v39 = vld [vmem:[%s1097_s5 + $0x88] sm:$0xff]  ;;  %v1193_v44 = vld [vmem:[%s1097_s5 + $0x90] sm:$0xff]  ;;  %v1200_v46 = vmul.f32 %v1162_v29, %v1162_v29  ;;  %v246_v47 = vrot.slane %v245_v26, 2  ;;  %v252_v48 = vrot.slane %v251_v27, 2  ;;  %v263_v49 = vadd.f32 %v262_v28, %v215_v13 }
  0x45   : > { %1627 = vst [vmem:[#allocation20_spill] sm:$0xff] %v1175_v38  ;;  %1628 = vst [vmem:[#allocation21_spill] sm:$0xff] %v1178_v39  ;;  %v1196_v45 = vld [vmem:[%s1097_s5 + $0x98] sm:$0xff]  ;;  %v1203_v50 = vld [vmem:[%s1097_s5 + $0xa0] sm:$0xff]  ;;  %v1207_v51 = vmul.f32 %v1165_v32, %v1165_v32  ;;  %v1211_v52 = vmul.f32 %v1168_v33, %v1168_v33  ;;  %v269_v53 = vadd.f32 %v268_v30, %v216_v16  ;;  %v258_v0 = vrot.slane %v257_v43, 2  ;;  %s882_s20 = sshll.u32 %s964_s19, 4  ;;  %s883_s20 = int_to_ptr.vmem [resolvable:$false] %s882_s20 }
  0x46   : > { %1629 = vst [vmem:[#allocation22_spill] sm:$0xff] %v1193_v44  ;;  %1630 = vst [vmem:[#allocation23_spill] sm:$0xff] %v1196_v45  ;;  %v275_v54 = vadd.f32 %v274_v31, %v217_v17  ;;  %v1214_v55 = vld [vmem:[%s1097_s5 + $0xa8] sm:$0xff]  ;;  %v1218_v56 = vmul.f32 %v1175_v38, %v1175_v38  ;;  %v1222_v57 = vmul.f32 %v1178_v39, %v1178_v39  ;;  %v1225_v60 = vld [vmem:[%s1097_s5 + $0xb0] sm:$0xff]  ;;  %v292_v1 = vrot.slane %v220_v34, 4  ;;  %s884_s25 = scalar_lea.vmem %s883_s20, 8192  ;;  %p885_p7 = scmp.lt.s32.totalorder %s1521_s7, %s883_s20 }
  0x47   : > { %1631 = vst [vmem:[#allocation24_spill] sm:$0xff] %v1203_v50  ;;  %1632 = vst [vmem:[#allocation25_spill] sm:$0xff] %v1214_v55  ;;  %v281_v58 = vadd.f32 %v280_v36, %v218_v18  ;;  %v287_v59 = vadd.f32 %v286_v37, %v219_v19  ;;  %v1228_v61 = vld [vmem:[%s1097_s5 + $0xb8] sm:$0xff]  ;;  %v1232_v62 = vmul.f32 %v1193_v44, %v1193_v44  ;;  %v1239_v5 = vld [vmem:[%s1097_s5 + $0xc0] sm:$0xff]  ;;  %v264_v15 = vrot.slane %v263_v49, 2  ;;  %p886_p13 = scmp.lt.s32.totalorder %s884_s25, %s878_s18 }
  0x48   : > { %1633 = vst [vmem:[#allocation26_spill] sm:$0xff] %v1225_v60  ;;  %1634 = vst [vmem:[#allocation27_spill] sm:$0xff] %v1228_v61  ;;  %v1236_v63 = vmul.f32 %v1196_v45, %v1196_v45  ;;  %v1242_v6 = vld [vmem:[%s1097_s5 + $0xc8] sm:$0xff]  ;;  %v1246_v12 = vmul.f32 %v1203_v50, %v1203_v50  ;;  %v247_v13 = vadd.f32 %v246_v47, %v245_v26  ;;  %v1249_v16 = vld [vmem:[%s1097_s5 + $0xd0] sm:$0xff]  ;;  %v270_v18 = vrot.slane %v269_v53, 2 }
  0x49   : > { %1635 = vst [vmem:[#allocation28_spill] sm:$0xff] %v1239_v5  ;;  %1636 = vst [vmem:[#allocation29_spill] sm:$0xff] %v1242_v6  ;;  %v253_v14 = vadd.f32 %v252_v48, %v251_v27  ;;  %v1253_v17 = vmul.f32 %v1214_v55, %v1214_v55  ;;  %v276_v19 = vrot.slane %v275_v54, 2  ;;  %v298_v22 = vrot.slane %v221_v35, 4  ;;  %v1256_v28 = vld [vmem:[%s1097_s5 + $0xd8] sm:$0xff]  ;;  %v1267_v36 = vld [vmem:[%s1097_s5 + $0xe0] sm:$0xff]  ;;  %p887_p3 = por %p886_p13, %p885_p7 }
  0x4a   : > { %1637 = vst [vmem:[#allocation30_spill] sm:$0xff] %v1249_v16  ;;  %1638 = vst [vmem:[#allocation31_spill] sm:$0xff] %v1256_v28  ;;  %v1260_v30 = vmul.f32 %v1225_v60, %v1225_v60  ;;  %v1264_v26 = vmul.f32 %v1228_v61, %v1228_v61  ;;  %v282_v27 = vrot.slane %v281_v58, 2  ;;  %v288_v31 = vrot.slane %v287_v59, 2  ;;  %v1270_v37 = vld [vmem:[%s1097_s5 + $0xe8] sm:$0xff]  ;;  %v1281_v50 = vld [vmem:[%s1097_s5 + $0xf0] sm:$0xff] }
  0x4b   : > { %1639 = vst [vmem:[#allocation32_spill] sm:$0xff] %v1267_v36  ;;  %1640 = vst [vmem:[#allocation33_spill] sm:$0xff] %v1270_v37  ;;  %v1274_v47 = vmul.f32 %v1239_v5, %v1239_v5  ;;  %v1278_v48 = vmul.f32 %v1242_v6, %v1242_v6  ;;  %v259_v60 = vadd.f32 %v258_v0, %v257_v43  ;;  %v1284_v61 = vld [vmem:[%s1097_s5 + $0xf8] sm:$0xff]  ;;  %v248_v44 = vrot.slane %v247_v13, 1  ;;  %p888_p6 = pnand %p887_p3, %p881_p0 }
  0x4c   : > { %v293_v55 = vadd.f32 %v292_v1, %v220_v34  ;;  %1641 = vst [vmem:[#allocation34_spill] sm:$0xff] %v1281_v50  ;;  %1642 = vst [vmem:[#allocation35_spill] sm:$0xff] %v1284_v61  ;;  %v1288_v45 = vmul.f32 %v1249_v16, %v1249_v16  ;;  %v254_v39 = vrot.slane %v253_v14, 1  ;;  %v265_v38 = vadd.f32 %v264_v15, %v263_v49 }
  0x4d   : > { %v1292_v5 = vmul.f32 %v1256_v28, %v1256_v28  ;;  %v271_v33 = vadd.f32 %v270_v18, %v269_v53  ;;  %v277_v6 = vadd.f32 %v276_v19, %v275_v54  ;;  %v299_v32 = vadd.f32 %v298_v22, %v221_v35 }
  0x4e   : > { %v1296_v34 = vmul.f32 %v1267_v36, %v1267_v36  ;;  %v1300_v43 = vmul.f32 %v1270_v37, %v1270_v37  ;;  %v283_v0 = vadd.f32 %v282_v27, %v281_v58  ;;  %v289_v1 = vadd.f32 %v288_v31, %v287_v59 }
  0x4f   : > { %v1304_v49 = vmul.f32 %v1281_v50, %v1281_v50  ;;  %v1308_v15 = vmul.f32 %v1284_v61, %v1284_v61  ;;  %v260_v53 = vrot.slane %v259_v60, 1  ;;  %v294_v35 = vrot.slane %v293_v55, 2 }
  0x50   : > { %v1310_v54 = vadd.f32 %v248_v44, %v247_v13  ;;  %v1312_v18 = vadd.f32 %v254_v39, %v253_v14  ;;  %v266_v19 = vrot.slane %v265_v38, 1  ;;  %v304_v22 = vrot.slane %v1182_v40, 4 }
  0x51   : > { %v272_v37 = vrot.slane %v271_v33, 1  ;;  %v278_v58 = vrot.slane %v277_v6, 1  ;;  %v300_v59 = vrot.slane %v299_v32, 2  ;;  %v310_v27 = vrot.slane %v1186_v41, 4 }
  0x52   : > { %v284_v31 = vrot.slane %v283_v0, 1  ;;  %v290_v50 = vrot.slane %v289_v1, 1  ;;  %v316_v36 = vrot.slane %v1190_v42, 4  ;;  %v322_v61 = vrot.slane %v1200_v46, 4 }
  0x53   : > { %v1318_v28 = vadd.f32 %v260_v53, %v259_v60  ;;  %v295_v44 = vadd.f32 %v294_v35, %v293_v55  ;;  %v328_v39 = vrot.slane %v1207_v51, 4  ;;  %v334_v13 = vrot.slane %v1211_v52, 4 }
  0x54   : > { %v1322_v14 = vadd.f32 %v266_v19, %v265_v38  ;;  %v305_v16 = vadd.f32 %v304_v22, %v1182_v40  ;;  %v340_v29 = vrot.slane %v1218_v56, 4  ;;  %v346_v25 = vrot.slane %v1222_v57, 4 }
  0x55   : > { %v1327_v24 = vadd.f32 %v272_v37, %v271_v33  ;;  %v1329_v23 = vadd.f32 %v278_v58, %v277_v6  ;;  %v301_v21 = vadd.f32 %v300_v59, %v299_v32  ;;  %v311_v60 = vadd.f32 %v310_v27, %v1186_v41 }
  0x56   : > { %v1332_v55 = vadd.f32 %v284_v31, %v283_v0  ;;  %v1334_v53 = vadd.f32 %v290_v50, %v289_v1  ;;  %v317_v38 = vadd.f32 %v316_v36, %v1190_v42  ;;  %v323_v35 = vadd.f32 %v322_v61, %v1200_v46 }
  0x57   : > { %v296_v40 = vrot.slane %v295_v44, 1  ;;  %v329_v19 = vadd.f32 %v328_v39, %v1207_v51  ;;  %v335_v22 = vadd.f32 %v334_v13, %v1211_v52  ;;  %v352_v33 = vrot.slane %v1232_v62, 4 }
  0x58   : > { %v306_v6 = vrot.slane %v305_v16, 2  ;;  %v341_v32 = vadd.f32 %v340_v29, %v1218_v56  ;;  %v347_v41 = vadd.f32 %v346_v25, %v1222_v57  ;;  %v358_v37 = vrot.slane %v1236_v63, 4 }
  0x59   : > { %v302_v50 = vrot.slane %v301_v21, 1  ;;  %v312_v0 = vrot.slane %v311_v60, 2  ;;  %v364_v42 = vrot.slane %v1246_v12, 4  ;;  %v370_v46 = vrot.slane %v1253_v17, 4 }
  0x5a   : > { %v318_v61 = vrot.slane %v317_v38, 2  ;;  %v324_v36 = vrot.slane %v323_v35, 2  ;;  %v376_v51 = vrot.slane %v1260_v30, 4  ;;  %v382_v52 = vrot.slane %v1264_v26, 4 }
  0x5b   : > { %v1348_v1 = vadd.f32 %v296_v40, %v295_v44  ;;  %v330_v58 = vrot.slane %v329_v19, 2  ;;  %v336_v29 = vrot.slane %v335_v22, 2  ;;  %v353_v25 = vadd.f32 %v352_v33, %v1232_v62 }
  0x5c   : > { %v307_v56 = vadd.f32 %v306_v6, %v305_v16  ;;  %v342_v57 = vrot.slane %v341_v32, 2  ;;  %v348_v59 = vrot.slane %v347_v41, 2  ;;  %v359_v27 = vadd.f32 %v358_v37, %v1236_v63 }
  0x5d   : > { %v1352_v31 = vadd.f32 %v302_v50, %v301_v21  ;;  %v313_v39 = vadd.f32 %v312_v0, %v311_v60  ;;  %v365_v13 = vadd.f32 %v364_v42, %v1246_v12  ;;  %v371_v20 = vadd.f32 %v370_v46, %v1253_v17 }
  0x5e   : > { %v319_v11 = vadd.f32 %v318_v61, %v317_v38  ;;  %v325_v10 = vadd.f32 %v324_v36, %v323_v35  ;;  %v377_v44 = vadd.f32 %v376_v51, %v1260_v30  ;;  %v383_v40 = vadd.f32 %v382_v52, %v1264_v26 }
  0x5f   : > { %v331_v9 = vadd.f32 %v330_v58, %v329_v19  ;;  %v337_v62 = vadd.f32 %v336_v29, %v335_v22  ;;  %v354_v16 = vrot.slane %v353_v25, 2  ;;  %v388_v33 = vrot.slane %v1274_v47, 4 }
  0x60   : > { %v308_v6 = vrot.slane %v307_v56, 1  ;;  %v343_v63 = vadd.f32 %v342_v57, %v341_v32  ;;  %v349_v21 = vadd.f32 %v348_v59, %v347_v41  ;;  %v360_v37 = vrot.slane %v359_v27, 2 }
  0x61   : > { %v314_v60 = vrot.slane %v313_v39, 1  ;;  %v366_v50 = vrot.slane %v365_v13, 2  ;;  %v372_v12 = vrot.slane %v371_v20, 2  ;;  %v394_v17 = vrot.slane %v1278_v48, 4 }
  0x62   : > { %v320_v38 = vrot.slane %v319_v11, 1  ;;  %v326_v35 = vrot.slane %v325_v10, 1  ;;  %v378_v0 = vrot.slane %v377_v44, 2  ;;  %v384_v30 = vrot.slane %v383_v40, 2 }
  0x63   : > { %v332_v42 = vrot.slane %v331_v9, 1  ;;  %v338_v26 = vrot.slane %v337_v62, 1  ;;  %v355_v19 = vadd.f32 %v354_v16, %v353_v25  ;;  %v389_v22 = vadd.f32 %v388_v33, %v1274_v47 }
  0x64   : > { %v1361_v46 = vadd.f32 %v308_v6, %v307_v56  ;;  %v344_v61 = vrot.slane %v343_v63, 1  ;;  %v350_v32 = vrot.slane %v349_v21, 1  ;;  %v361_v41 = vadd.f32 %v360_v37, %v359_v27 }
  0x65   : > { %v1363_v36 = vadd.f32 %v314_v60, %v313_v39  ;;  %v367_v51 = vadd.f32 %v366_v50, %v365_v13  ;;  %v373_v52 = vadd.f32 %v372_v12, %v371_v20  ;;  %v395_v58 = vadd.f32 %v394_v17, %v1278_v48 }
  0x66   : > { %v1366_v29 = vadd.f32 %v320_v38, %v319_v11  ;;  %v1368_v57 = vadd.f32 %v326_v35, %v325_v10  ;;  %v379_v59 = vadd.f32 %v378_v0, %v377_v44  ;;  %v385_v8 = vadd.f32 %v384_v30, %v383_v40 }
  0x67   : > { %v1370_v25 = vadd.f32 %v332_v42, %v331_v9  ;;  %v1372_v47 = vadd.f32 %v338_v26, %v337_v62  ;;  %v356_v56 = vrot.slane %v355_v19, 1  ;;  %v390_v16 = vrot.slane %v389_v22, 2 }
  0x68   : > { %v1374_v33 = vadd.f32 %v344_v61, %v343_v63  ;;  %v1376_v27 = vadd.f32 %v350_v32, %v349_v21  ;;  %v362_v39 = vrot.slane %v361_v41, 1  ;;  %v436_v20 = vmax.f32 %v1310_v54, 1e-24 }
  0x69   : > { %v368_v48 = vrot.slane %v367_v51, 1  ;;  %v374_v11 = vrot.slane %v373_v52, 1  ;;  %v396_v13 = vrot.slane %v395_v58, 2  ;;  %v437_v10 = vmax.f32 %v1312_v18, 1e-24 }
  0x6a   : > { %v380_v44 = vrot.slane %v379_v59, 1  ;;  %v386_v40 = vrot.slane %v385_v8, 1  ;;  %v400_v9 = vrot.slane %v1288_v45, 4  ;;  %v438_v62 = vmax.f32 %v1318_v28, 1e-24 }
  0x6b   : > { %v1382_v6 = vadd.f32 %v356_v56, %v355_v19  ;;  %v1384_v63 = vadd.f32 %v390_v16, %v389_v22  ;;  %v406_v21 = vrot.slane %v1292_v5, 4  ;;  %v439_v37 = vmax.f32 %v1322_v14, 1e-24 }
  0x6c   : > { %v1388_v54 = vadd.f32 %v362_v39, %v361_v41  ;;  %v412_v60 = vrot.slane %v1296_v34, 4  ;;  %v440_v18 = vmax.f32 %v1327_v24, 1e-24  ;;  %784 = vrsqrt.f32 %v436_v20 }
  0x6d   : > { %v1392_v50 = vadd.f32 %v368_v48, %v367_v51  ;;  %v418_v12 = vrot.slane %v1300_v43, 4  ;;  %v441_v28 = vmax.f32 %v1329_v23, 1e-24  ;;  %786 = vrsqrt.f32 %v437_v10 }
  0x6e   : > { %v401_v17 = vadd.f32 %v400_v9, %v1288_v45  ;;  %v424_v38 = vrot.slane %v1304_v49, 4  ;;  %v442_v14 = vmax.f32 %v1332_v55, 1e-24  ;;  %788 = vrsqrt.f32 %v438_v62 }
  0x6f   : > { %v407_v35 = vadd.f32 %v406_v21, %v1292_v5  ;;  %v430_v0 = vrot.slane %v1308_v15, 4  ;;  %v443_v24 = vmax.f32 %v1334_v53, 1e-24  ;;  %790 = vrsqrt.f32 %v439_v37 }
  0x70   : > { %v397_v30 = vadd.f32 %v396_v13, %v395_v58  ;;  %v413_v42 = vadd.f32 %v412_v60, %v1296_v34  ;;  %v444_v23 = vmax.f32 %v1348_v1, 1e-24  ;;  %792 = vrsqrt.f32 %v440_v18 }
  0x71   : > { %v1404_v26 = vadd.f32 %v374_v11, %v373_v52  ;;  %v419_v45 = vadd.f32 %v418_v12, %v1300_v43  ;;  %v445_v55 = vmax.f32 %v1352_v31, 1e-24  ;;  %794 = vrsqrt.f32 %v441_v28 }
  0x72   : > { %v402_v19 = vrot.slane %v401_v17, 2  ;;  %v425_v5 = vadd.f32 %v424_v38, %v1304_v49  ;;  %v446_v22 = vmax.f32 %v1361_v46, 1e-24  ;;  %796 = vrsqrt.f32 %v442_v14 }
  0x73   : > { %v408_v53 = vrot.slane %v407_v35, 2  ;;  %v431_v61 = vadd.f32 %v430_v0, %v1308_v15  ;;  %v447_v34 = vmax.f32 %v1363_v36, 1e-24  ;;  %798 = vrsqrt.f32 %v443_v24 }
  0x74   : > { %v1412_v1 = vadd.f32 %v380_v44, %v379_v59  ;;  %v414_v32 = vrot.slane %v413_v42, 2  ;;  %v448_v43 = vmax.f32 %v1366_v29, 1e-24  ;;  %800 = vrsqrt.f32 %v444_v23 }
  0x75   : > { %v1415_v31 = vadd.f32 %v386_v40, %v385_v8  ;;  %v420_v41 = vrot.slane %v419_v45, 2  ;;  %v449_v49 = vmax.f32 %v1368_v57, 1e-24  ;;  %802 = vrsqrt.f32 %v445_v55 }
  0x76   : > { %v1418_v46 = vpop.eup %784  ;;  %v403_v51 = vadd.f32 %v402_v19, %v401_v17  ;;  %v426_v52 = vrot.slane %v425_v5, 2  ;;  %v450_v15 = vmax.f32 %v1370_v25, 1e-24  ;;  %804 = vrsqrt.f32 %v446_v22 }
  0x77   : > { %v1421_v36 = vpop.eup %786  ;;  %v409_v58 = vadd.f32 %v408_v53, %v407_v35  ;;  %v432_v59 = vrot.slane %v431_v61, 2  ;;  %v451_v29 = vmax.f32 %v1372_v47, 1e-24  ;;  %806 = vrsqrt.f32 %v447_v34 }
  0x78   : > { %v1424_v8 = vpop.eup %788  ;;  %v392_v56 = vrot.slane %v1384_v63, 1  ;;  %v415_v57 = vadd.f32 %v414_v32, %v413_v42  ;;  %v452_v16 = vmax.f32 %v1374_v33, 1e-24  ;;  %808 = vrsqrt.f32 %v448_v43 }
  0x79   : > { %v1428_v39 = vpop.eup %790  ;;  %v398_v20 = vrot.slane %v397_v30, 1  ;;  %v421_v25 = vadd.f32 %v420_v41, %v419_v45  ;;  %v453_v48 = vmax.f32 %v1376_v27, 1e-24  ;;  %810 = vrsqrt.f32 %v449_v49 }
  0x7a   : > { %v1431_v11 = vpop.eup %792  ;;  %v404_v13 = vrot.slane %v403_v51, 1  ;;  %v427_v47 = vadd.f32 %v426_v52, %v425_v5  ;;  %v454_v10 = vmax.f32 %v1382_v6, 1e-24  ;;  %812 = vrsqrt.f32 %v450_v15 }
  0x7b   : > { %v1434_v44 = vpop.eup %794  ;;  %v410_v40 = vrot.slane %v409_v58, 1  ;;  %v433_v9 = vadd.f32 %v432_v59, %v431_v61  ;;  %v455_v33 = vmax.f32 %v1388_v54, 1e-24  ;;  %814 = vrsqrt.f32 %v451_v29 }
  0x7c   : > { %v1437_v62 = vpop.eup %796  ;;  %v393_v21 = vadd.f32 %v392_v56, %v1384_v63  ;;  %v416_v27 = vrot.slane %v415_v57, 1  ;;  %v456_v37 = vmax.f32 %v1392_v50, 1e-24  ;;  %816 = vrsqrt.f32 %v452_v16 }
  0x7d   : > { %v1441_v60 = vpop.eup %798  ;;  %v399_v18 = vadd.f32 %v398_v20, %v397_v30  ;;  %v422_v6 = vrot.slane %v421_v25, 1  ;;  %v457_v12 = vmax.f32 %v1404_v26, 1e-24  ;;  %818 = vrsqrt.f32 %v453_v48 }
  0x7e   : > { %v801_v28 = vpop.eup %800  ;;  %v405_v17 = vadd.f32 %v404_v13, %v403_v51  ;;  %v428_v38 = vrot.slane %v427_v47, 1  ;;  %v458_v54 = vmax.f32 %v1412_v1, 1e-24  ;;  %820 = vrsqrt.f32 %v454_v10 }
  0x7f   : > { %v803_v14 = vpop.eup %802  ;;  %v411_v35 = vadd.f32 %v410_v40, %v409_v58  ;;  %v434_v63 = vrot.slane %v433_v9, 1  ;;  %v459_v0 = vmax.f32 %v1415_v31, 1e-24  ;;  %822 = vrsqrt.f32 %v455_v33  ;;  %v1643_v40 = vld [vmem:[#allocation8_spill] sm:$0xff]  ;;  %v1644_v33 = vld [vmem:[#allocation9_spill] sm:$0xff] }
  0x80   : > { %v805_v50 = vpop.eup %804  ;;  %v417_v24 = vadd.f32 %v416_v27, %v415_v57  ;;  %v460_v42 = vmax.f32 %v393_v21, 1e-24  ;;  %824 = vrsqrt.f32 %v456_v37  ;;  %v423_v23 = vadd.f32 %v422_v6, %v421_v25  ;;  %v1645_v27 = vld [vmem:[#allocation10_spill] sm:$0xff] }
  0x81   : > { %v807_v30 = vpop.eup %806  ;;  %v461_v26 = vmax.f32 %v399_v18, 1e-24  ;;  %826 = vrsqrt.f32 %v457_v12  ;;  %v429_v55 = vadd.f32 %v428_v38, %v427_v47  ;;  %v462_v19 = vmax.f32 %v405_v17, 1e-24  ;;  %v1649_v6 = vld [vmem:[#allocation14_spill] sm:$0xff] }
  0x82   : > { %v809_v45 = vpop.eup %808  ;;  %828 = vrsqrt.f32 %v458_v54  ;;  %v435_v22 = vadd.f32 %v434_v63, %v433_v9  ;;  %v463_v53 = vmax.f32 %v411_v35, 1e-24  ;;  %v464_v34 = vmax.f32 %v417_v24, 1e-24  ;;  %v1652_v54 = vld [vmem:[#allocation17_spill] sm:$0xff]  ;;  %v1653_v35 = vld [vmem:[#allocation18_spill] sm:$0xff] }
  0x83   : > { %v811_v5 = vpop.eup %810  ;;  %830 = vrsqrt.f32 %v459_v0  ;;  %v465_v32 = vmax.f32 %v423_v23, 1e-24  ;;  %v466_v31 = vmax.f32 %v429_v55, 1e-24  ;;  %v500_v25 = vmul.f32 %v1418_v46, %v1107_v2  ;;  %v1646_v2 = vld [vmem:[#allocation11_spill] sm:$0xff]  ;;  %v1656_v23 = vld [vmem:[#allocation21_spill] sm:$0xff] }
  0x84   : > { %v813_v61 = vpop.eup %812  ;;  %832 = vrsqrt.f32 %v460_v42  ;;  %v467_v49 = vmax.f32 %v435_v22, 1e-24  ;;  %v501_v48 = vmul.f32 %v1421_v36, %v1110_v3  ;;  %v502_v13 = vmul.f32 %v1424_v8, %v1113_v4  ;;  %v1647_v36 = vld [vmem:[#allocation12_spill] sm:$0xff]  ;;  %v1648_v4 = vld [vmem:[#allocation13_spill] sm:$0xff]  ;;  %v1658_v55 = vld [vmem:[#allocation23_spill] sm:$0xff] }
  0x85   : > { %v815_v1 = vpop.eup %814  ;;  %834 = vrsqrt.f32 %v461_v26  ;;  %v503_v47 = vmul.f32 %v1428_v39, %v1120_v7  ;;  %v504_v9 = vmul.f32 %v1431_v11, %v1643_v40  ;;  %v505_v21 = vmul.f32 %v1434_v44, %v1644_v33  ;;  %v1650_v39 = vld [vmem:[#allocation15_spill] sm:$0xff]  ;;  %v1651_v11 = vld [vmem:[#allocation16_spill] sm:$0xff]  ;;  %v1657_v26 = vld [vmem:[#allocation22_spill] sm:$0xff] }
  0x86   : > { %v817_v43 = vpop.eup %816  ;;  %836 = vrsqrt.f32 %v462_v19  ;;  %v506_v37 = vmul.f32 %v1437_v62, %v1645_v27  ;;  %v507_v46 = vmul.f32 %v1441_v60, %v1646_v2  ;;  %v508_v18 = vmul.f32 %v801_v28, %v1647_v36  ;;  %v1654_v62 = vld [vmem:[#allocation19_spill] sm:$0xff]  ;;  %v1655_v60 = vld [vmem:[#allocation20_spill] sm:$0xff]  ;;  %v1660_v22 = vld [vmem:[#allocation25_spill] sm:$0xff] }
  0x87   : > { %v819_v41 = vpop.eup %818  ;;  %838 = vrsqrt.f32 %v463_v53  ;;  %v509_v8 = vmul.f32 %v803_v14, %v1648_v4  ;;  %v510_v7 = vmul.f32 %v805_v50, %v1649_v6  ;;  %v511_v12 = vmul.f32 %v807_v30, %v1650_v39  ;;  %v1659_v19 = vld [vmem:[#allocation24_spill] sm:$0xff]  ;;  %v1665_v40 = vld [vmem:[#allocation30_spill] sm:$0xff]  ;;  %v1666_v33 = vld [vmem:[#allocation31_spill] sm:$0xff] }
  0x88   : > { %v821_v51 = vpop.eup %820  ;;  %840 = vrsqrt.f32 %v464_v34  ;;  %v512_v38 = vmul.f32 %v809_v45, %v1651_v11  ;;  %v513_v44 = vmul.f32 %v811_v5, %v1652_v54  ;;  %v514_v63 = vmul.f32 %v813_v61, %v1653_v35  ;;  %v1661_v45 = vld [vmem:[#allocation26_spill] sm:$0xff]  ;;  %v1662_v5 = vld [vmem:[#allocation27_spill] sm:$0xff]  ;;  %v1663_v61 = vld [vmem:[#allocation28_spill] sm:$0xff] }
  0x89   : > { %v823_v52 = vpop.eup %822  ;;  %842 = vrsqrt.f32 %v465_v32  ;;  %v515_v0 = vmul.f32 %v815_v1, %v1654_v62  ;;  %v516_v42 = vmul.f32 %v817_v43, %v1655_v60  ;;  %v517_v28 = vmul.f32 %v819_v41, %v1656_v23  ;;  %v1664_v1 = vld [vmem:[#allocation29_spill] sm:$0xff]  ;;  %v1669_v36 = vld [vmem:[#allocation34_spill] sm:$0xff]  ;;  %v1670_v4 = vld [vmem:[#allocation35_spill] sm:$0xff] }
  0x8a   : > { %v825_v15 = vpop.eup %824  ;;  %844 = vrsqrt.f32 %v466_v31  ;;  %v518_v14 = vmul.f32 %v821_v51, %v1657_v26  ;;  %v519_v50 = vmul.f32 %v823_v52, %v1658_v55  ;;  %v1667_v51 = vld [vmem:[#allocation32_spill] sm:$0xff]  ;;  %v1668_v52 = vld [vmem:[#allocation33_spill] sm:$0xff] }
  0x8b   : > { %v827_v58 = vpop.eup %826  ;;  %846 = vrsqrt.f32 %v467_v49  ;;  %v520_v30 = vmul.f32 %v825_v15, %v1659_v19 }
  0x8c   : > { %v829_v59 = vpop.eup %828  ;;  %v521_v53 = vmul.f32 %v827_v58, %v1660_v22 }
  0x8d   : > { %v831_v29 = vpop.eup %830  ;;  %v522_v34 = vmul.f32 %v829_v59, %v1661_v45 }
  0x8e   : > { %v833_v56 = vpop.eup %832  ;;  %v523_v32 = vmul.f32 %v831_v29, %v1662_v5 }
  0x8f   : > { %v835_v57 = vpop.eup %834  ;;  %v524_v31 = vmul.f32 %v833_v56, %v1663_v61 }
  0x90   : > { %v837_v16 = vpop.eup %836  ;;  %v525_v49 = vmul.f32 %v835_v57, %v1664_v1 }
  0x91   : > { %v839_v20 = vpop.eup %838  ;;  %v526_v43 = vmul.f32 %v837_v16, %v1665_v40 }
  0x92   : > { %v841_v10 = vpop.eup %840  ;;  %v527_v41 = vmul.f32 %v839_v20, %v1666_v33 }
  0x93   : > { %v843_v3 = vpop.eup %842  ;;  %v528_v2 = vmul.f32 %v841_v10, %v1667_v51 }
  0x94   : > { %v845_v17 = vpop.eup %844  ;;  %v529_v15 = vmul.f32 %v843_v3, %v1668_v52 }
  0x95   : > { %v847_v24 = vpop.eup %846  ;;  %v530_v58 = vmul.f32 %v845_v17, %v1669_v36 }
  0x96   : > { %v531_v59 = vmul.f32 %v847_v24, %v1670_v4 }
  0xbd   : > { %v536_v27 = vpop.permute.xlu0 %535 }
  0xbe   : > { %v538_v6 = vmul.f32 %v536_v27, %v500_v25  ;;  %v539_v29 = vmul.f32 %v536_v27, %v501_v48  ;;  %v540_v39 = vmul.f32 %v536_v27, %v502_v13  ;;  %v541_v56 = vmul.f32 %v536_v27, %v503_v47 }
  0xbf   : > { %v542_v11 = vmul.f32 %v536_v27, %v504_v9  ;;  %v543_v57 = vmul.f32 %v536_v27, %v505_v21  ;;  %v544_v54 = vmul.f32 %v536_v27, %v506_v37  ;;  %v545_v16 = vmul.f32 %v536_v27, %v507_v46 }
  0xc0   : > { %v546_v35 = vmul.f32 %v536_v27, %v508_v18  ;;  %v547_v20 = vmul.f32 %v536_v27, %v509_v8  ;;  %v548_v62 = vmul.f32 %v536_v27, %v510_v7  ;;  %v549_v60 = vmul.f32 %v536_v27, %v511_v12  ;;  %570 = vst [vmem:[%s1488_s21] sm:$0xff] %v538_v6 }
  0xc1   : > { %571 = vst [vmem:[%s1488_s21 + $0x8] sm:$0xff] %v539_v29  ;;  %572 = vst [vmem:[%s1488_s21 + $0x10] sm:$0xff] %v540_v39  ;;  %v550_v25 = vmul.f32 %v536_v27, %v512_v38  ;;  %v551_v48 = vmul.f32 %v536_v27, %v513_v44  ;;  %v552_v13 = vmul.f32 %v536_v27, %v514_v63 }
  0xc2   : > { %573 = vst [vmem:[%s1488_s21 + $0x18] sm:$0xff] %v541_v56  ;;  %v553_v47 = vmul.f32 %v536_v27, %v515_v0  ;;  %574 = vst [vmem:[%s1488_s21 + $0x20] sm:$0xff] %v542_v11  ;;  %v554_v10 = vmul.f32 %v536_v27, %v516_v42  ;;  %v555_v9 = vmul.f32 %v536_v27, %v517_v28 }
  0xc3   : > { %575 = vst [vmem:[%s1488_s21 + $0x28] sm:$0xff] %v543_v57  ;;  %576 = vst [vmem:[%s1488_s21 + $0x30] sm:$0xff] %v544_v54  ;;  %v556_v21 = vmul.f32 %v536_v27, %v518_v14  ;;  %v557_v37 = vmul.f32 %v536_v27, %v519_v50  ;;  %v558_v46 = vmul.f32 %v536_v27, %v520_v30 }
  0xc4   : > { %577 = vst [vmem:[%s1488_s21 + $0x38] sm:$0xff] %v545_v16  ;;  %578 = vst [vmem:[%s1488_s21 + $0x40] sm:$0xff] %v546_v35  ;;  %v559_v3 = vmul.f32 %v536_v27, %v521_v53  ;;  %v560_v18 = vmul.f32 %v536_v27, %v522_v34  ;;  %v561_v8 = vmul.f32 %v536_v27, %v523_v32 }
  0xc5   : > { %579 = vst [vmem:[%s1488_s21 + $0x48] sm:$0xff] %v547_v20  ;;  %580 = vst [vmem:[%s1488_s21 + $0x50] sm:$0xff] %v548_v62  ;;  %v562_v7 = vmul.f32 %v536_v27, %v524_v31  ;;  %v563_v12 = vmul.f32 %v536_v27, %v525_v49  ;;  %v564_v17 = vmul.f32 %v536_v27, %v526_v43 }
  0xc6   : > { %581 = vst [vmem:[%s1488_s21 + $0x58] sm:$0xff] %v549_v60  ;;  %582 = vst [vmem:[%s1488_s21 + $0x60] sm:$0xff] %v550_v25  ;;  %v565_v38 = vmul.f32 %v536_v27, %v527_v41  ;;  %v566_v44 = vmul.f32 %v536_v27, %v528_v2  ;;  %v567_v63 = vmul.f32 %v536_v27, %v529_v15 }
  0xc7   : > { %583 = vst [vmem:[%s1488_s21 + $0x68] sm:$0xff] %v551_v48  ;;  %584 = vst [vmem:[%s1488_s21 + $0x70] sm:$0xff] %v552_v13  ;;  %v568_v0 = vmul.f32 %v536_v27, %v530_v58  ;;  %v569_v24 = vmul.f32 %v536_v27, %v531_v59 }
  0xc8   : > { %585 = vst [vmem:[%s1488_s21 + $0x78] sm:$0xff] %v553_v47  ;;  %586 = vst [vmem:[%s1488_s21 + $0x80] sm:$0xff] %v554_v10 }
  0xc9   : > { %587 = vst [vmem:[%s1488_s21 + $0x88] sm:$0xff] %v555_v9  ;;  %588 = vst [vmem:[%s1488_s21 + $0x90] sm:$0xff] %v556_v21 }
  0xca   : > { %589 = vst [vmem:[%s1488_s21 + $0x98] sm:$0xff] %v557_v37  ;;  %590 = vst [vmem:[%s1488_s21 + $0xa0] sm:$0xff] %v558_v46 }
  0xcb   : > { %591 = vst [vmem:[%s1488_s21 + $0xa8] sm:$0xff] %v559_v3  ;;  %592 = vst [vmem:[%s1488_s21 + $0xb0] sm:$0xff] %v560_v18 }
  0xcc   : > { %593 = vst [vmem:[%s1488_s21 + $0xb8] sm:$0xff] %v561_v8  ;;  %594 = vst [vmem:[%s1488_s21 + $0xc0] sm:$0xff] %v562_v7 }
  0xcd   : > { %595 = vst [vmem:[%s1488_s21 + $0xc8] sm:$0xff] %v563_v12  ;;  %596 = vst [vmem:[%s1488_s21 + $0xd0] sm:$0xff] %v564_v17 }
  0xce   : > { %597 = vst [vmem:[%s1488_s21 + $0xd8] sm:$0xff] %v565_v38  ;;  %598 = vst [vmem:[%s1488_s21 + $0xe0] sm:$0xff] %v566_v44 }
  0xcf   : > { %599 = vst [vmem:[%s1488_s21 + $0xe8] sm:$0xff] %v567_v63  ;;  %600 = vst [vmem:[%s1488_s21 + $0xf0] sm:$0xff] %v568_v0 }
  0xd0   : > { %601 = vst [vmem:[%s1488_s21 + $0xf8] sm:$0xff] %v569_v24 }
  0xd1   : > { %891 = shalt.err (!%p888_p6)
}
  0xd2   : > { %s892_s26 = scalar_lea.hbm %s1519_s15, 4096  ;;  %s896_s29 = scalar_lea.hbm %s1578_s2, 8192 }
  0xd3   : > { %p893_p4 = scmp.ne.s32.totalorder %s1519_s15, %s892_s26  ;;  %p897_p1 = scmp.lt.u32.totalorder %s1519_s15, %s1578_s2 }
  0xd4   : > { %p898_p2 = scmp.lt.u32.totalorder %s896_s29, %s892_s26  ;;  %p900_p8 = scmp.lt.u32.totalorder %s892_s26, %s1519_s15 }
  0xd5   : > { %p894_p10 = pnand %p893_p4, %p1671_p9 }
  0xd6   : > { %p899_p5 = por %p898_p2, %p897_p1 }
  0xd7   : > { %p895_p12 = pneg %p894_p10 }
  0xd8   : > { %p901_p11 = por %p900_p8, %p899_p5 }
  0xda   : > { %p902_p0 = pnand %p901_p11, %p895_p12 }
  0xdc   : > { %905 = shalt.err (!%p902_p0)
}
  0xdd   : > { %722 = dma.vmem_to_hbm [thread:$0]  (%p1671_p9), %s1521_s7, 4096, %s1519_s15, %s603_s16  }
  0xde PF: > { %s631_s30 = sand.u32 1, %s940_s9   ;;  %p1672_p7 = scmp.ne.s32.totalorder %s1611_s24, 0 }
  0xdf   : > { %p1673_p13 = scmp.ge.s32.totalorder %s960_s14, 2  ;;  %s632_s4 = scalar_lea.sflag [#allocation4], %s631_s30 }
  0xe1   : > { %p729_p3 = pnand %p1673_p13, %p1672_p7 }
  0xe3   : > { %935 = dma.done.wait (!%p729_p3), %s632_s4, 4096  }
  0xe4   : > { %937 = vsyncadd (!%p729_p3), %s632_s4, 4294963200  ;;  %s18_s14 = sadd.s32 1, %s960_s14   ;;  %s1674_s9 = smov %s944_s10 }
  0xe5   : > { %p15_p6 = scmp.ge.s32.totalorder %s18_s14, 4   ;;  %s1675_s10 = smov %s948_s11 }
  0xe6   : > { %s1676_s11 = smov %s1036_s23  ;;  %s1677_s12 = smov %s956_s13 }
  0xe7   : > { %s1678_s13 = smov %s1680_s17  ;;  %17 = sbr.rel (!%p15_p6) target bundleno = 6 (0x6), region = 73 }
  0xee   :  { %637 = vsyncpa [#allocation3], 1 }
  0xef   :  { %639 = vsyncpa [#allocation3 + $0x1], 1 }
  0xf0   :  { %640 = vsyncpa [#allocation4], 1 }
  0xf1   :  { %642 = vsyncpa [#allocation4 + $0x1], 1 }

</bundles_post_ra>
